<compile_context>
chip_gen: v7x
topology: tpu7x:2x2x1
jax: 0.10.0
libtpu: 0.0.40
codegen_flags: <defaults>
</compile_context>

<pallas_src>
import jax
import jax.numpy as jnp
from jax.experimental import pallas as pl
from jax.experimental.pallas import tpu as pltpu

_BN_EPS = 1e-5


def _res_stem_cifar_kernel(colsT_ref, wT_ref, gamma_ref, beta_ref, o_ref):
    # colsT_ref: (Kp, M)    bf16 im2col patches, transposed (taps on sublanes,
    #                        pixels dense on lanes); zero-padded K rows.
    # wT_ref:    (Cout, Kp) bf16 conv taps; row o = conv_w[o].reshape(-1), padded.
    # gamma_ref: (Cout, 1)  f32
    # beta_ref:  (Cout, 1)  f32
    # o_ref:     (Cout, M)  f32, lane-dense output (M is a multiple of 128).
    m = colsT_ref.shape[1]

    # --- 3x3 conv as a single bf16 MXU matmul with f32 accumulation ---
    acc = jnp.dot(wT_ref[...], colsT_ref[...],
                  preferred_element_type=jnp.float32)            # (Cout, M) f32

    # --- fused BatchNorm2d (training-mode batch stats, biased variance) ---
    # acc is only (Cout/8) x (M/128) dense vregs, so these lane reductions are
    # cheap; stats stay in f32.
    inv_m = jnp.float32(1.0 / m)
    mean = jnp.sum(acc, axis=1, keepdims=True) * inv_m           # (Cout, 1)
    ex2 = jnp.sum(acc * acc, axis=1, keepdims=True) * inv_m      # (Cout, 1)
    var = ex2 - mean * mean
    scale = gamma_ref[...] * jax.lax.rsqrt(var + _BN_EPS)        # (Cout, 1)
    shift = beta_ref[...] - mean * scale                         # (Cout, 1)

    # --- affine + ReLU on the lane-dense layout, unmasked full-width stores ---
    o_ref[...] = jnp.maximum(acc * scale + shift, jnp.float32(0.0))


@jax.jit
def res_stem_cifar(x_nchw, conv_w_oihw, gamma, beta):
    """x_nchw: (N, Cin, H, W); conv_w_oihw: (Cout, Cin, 3, 3). Returns NCHW f32."""
    N, Cin, H, W = x_nchw.shape
    Cout = conv_w_oihw.shape[0]
    M = N * H * W
    K = 9 * Cin
    Kp = ((K + 15) // 16) * 16          # bf16 sublane packing; zero rows are exact.

    # --- wrapper-side (XLA) glue, collapsed to one patches op + free reshapes ---
    x_bf16 = x_nchw.astype(jnp.bfloat16)
    # Output layout "CNHW": (Cin*9, N, H, W); channel ordering k = c*9 + (dy*3+dx).
    colsT = jax.lax.conv_general_dilated_patches(
        x_bf16, filter_shape=(3, 3), window_strides=(1, 1),
        padding=((1, 1), (1, 1)),
        dimension_numbers=("NCHW", "OIHW", "CNHW"))
    colsT = colsT.reshape(K, M)                                   # free reshape

    # Weight matrix in the same k ordering: wT[o, c*9 + dy*3 + dx] = w[o,c,dy,dx].
    wT = conv_w_oihw.reshape(Cout, K).astype(jnp.bfloat16)

    if Kp != K:
        colsT = jnp.pad(colsT, ((0, Kp - K), (0, 0)))
        wT = jnp.pad(wT, ((0, 0), (0, Kp - K)))

    g = gamma.reshape(Cout, 1).astype(jnp.float32)
    b = beta.reshape(Cout, 1).astype(jnp.float32)

    # Single un-gridded VMEM block: colsT (32, 512) bf16 + out (16, 512) f32
    # are tiny; a grid would be pure per-step overhead at this size.
    outT = pl.pallas_call(
        _res_stem_cifar_kernel,
        out_shape=jax.ShapeDtypeStruct((Cout, M), jnp.float32),
        in_specs=[pl.BlockSpec(memory_space=pltpu.MemorySpace.VMEM)] * 4,
        out_specs=pl.BlockSpec(memory_space=pltpu.MemorySpace.VMEM),
    )(colsT, wT, g, b)

    # (Cout, N*H*W) -> (Cout, N, H, W) is a free element-order reshape; one
    # small leading-axis transpose gives PyTorch's NCHW convention.
    return jnp.transpose(outT.reshape(Cout, N, H, W), (1, 0, 2, 3))


def _reference(x_nchw, conv_w_oihw, gamma, beta):
    """Pure-JAX f32 reference (same semantics) for a correctness check."""
    y = jax.lax.conv_general_dilated(
        x_nchw, conv_w_oihw, window_strides=(1, 1),
        padding=((1, 1), (1, 1)),
        dimension_numbers=("NCHW", "OIHW", "NCHW"))
    mean = jnp.mean(y, axis=(0, 2, 3), keepdims=True)
    var = jnp.mean((y - mean) ** 2, axis=(0, 2, 3), keepdims=True)
    yhat = (y - mean) * jax.lax.rsqrt(var + _BN_EPS)
    yhat = yhat * gamma.reshape(1, -1, 1, 1) + beta.reshape(1, -1, 1, 1)
    return jnp.maximum(yhat, 0.0)


if __name__ == "__main__":
    key = jax.random.PRNGKey(0)
    k_x, k_w = jax.random.split(key)

    # CIFAR stem: w_in = 3, w_out = 16; small spatial size.
    N, w_in, w_out, H, W = 2, 3, 16, 16, 16

    x = jax.random.normal(k_x, (N, w_in, H, W), dtype=jnp.float32)
    # Deterministic conv weight init (Kaiming-style scaling); default BN params.
    fan_in = w_in * 3 * 3
    conv_w = jax.random.normal(k_w, (w_out, w_in, 3, 3), dtype=jnp.float32)
    conv_w = conv_w * jnp.sqrt(2.0 / fan_in)
    gamma = jnp.ones((w_out,), jnp.float32)
    beta = jnp.zeros((w_out,), jnp.float32)

    out = jax.block_until_ready(res_stem_cifar(x, conv_w, gamma, beta))
    ref = jax.block_until_ready(_reference(x, conv_w, gamma, beta))

    assert out.shape == (N, w_out, H, W)
    # bf16 MXU inputs (f32 accumulation) -> slightly looser tolerance than f32.
    assert jnp.allclose(out, ref, atol=2e-2, rtol=2e-2)

    print("KERNEL_OK")
</pallas_src>

<mosaic_0001>
module attributes {stable_mosaic.version = 11 : i64} {
  func.func @_res_stem_cifar_kernel(%arg0: memref<32x512xbf16, #tpu.memory_space<vmem>>, %arg1: memref<16x32xbf16, #tpu.memory_space<vmem>>, %arg2: memref<16x1xf32, #tpu.memory_space<vmem>>, %arg3: memref<16x1xf32, #tpu.memory_space<vmem>>, %arg4: memref<16x512xf32, #tpu.memory_space<vmem>>) attributes {dimension_semantics = [], scalar_prefetch = 0 : i64, scratch_operands = 0 : i64, tpu.core_type = #tpu.core_type<tc>} {
    %c0 = arith.constant 0 : index
    %c0_0 = arith.constant 0 : index
    %0 = vector.load %arg1[%c0, %c0_0] : memref<16x32xbf16, #tpu.memory_space<vmem>>, vector<16x32xbf16>
    %c0_1 = arith.constant 0 : index
    %c0_2 = arith.constant 0 : index
    %1 = vector.load %arg0[%c0_1, %c0_2] : memref<32x512xbf16, #tpu.memory_space<vmem>>, vector<32x512xbf16>
    %cst = arith.constant dense<0.000000e+00> : vector<16x512xf32>
    %2 = tpu.matmul %0, %1, %cst {dimension_numbers = #tpu.dot_dimension_numbers<[1], [0], [0], [1], [0, 0, 1, 1], [], []>} : vector<16x32xbf16>, vector<32x512xbf16>, vector<16x512xf32> -> vector<16x512xf32>
    %cst_3 = arith.constant dense<0.000000e+00> : vector<16xf32>
    %3 = vector.multi_reduction <add>, %2, %cst_3 [1] : vector<16x512xf32> to vector<16xf32>
    %4 = vector.shape_cast %3 : vector<16xf32> to vector<16x1xf32>
    %cst_4 = arith.constant 0.001953125 : f32
    %5 = vector.broadcast %cst_4 : f32 to vector<16x1xf32>
    %6 = arith.mulf %4, %5 : vector<16x1xf32>
    %7 = arith.mulf %2, %2 : vector<16x512xf32>
    %cst_5 = arith.constant dense<0.000000e+00> : vector<16xf32>
    %8 = vector.multi_reduction <add>, %7, %cst_5 [1] : vector<16x512xf32> to vector<16xf32>
    %9 = vector.shape_cast %8 : vector<16xf32> to vector<16x1xf32>
    %cst_6 = arith.constant 0.001953125 : f32
    %10 = vector.broadcast %cst_6 : f32 to vector<16x1xf32>
    %11 = arith.mulf %9, %10 : vector<16x1xf32>
    %12 = arith.mulf %6, %6 : vector<16x1xf32>
    %13 = arith.subf %11, %12 : vector<16x1xf32>
    %c0_7 = arith.constant 0 : index
    %c0_8 = arith.constant 0 : index
    %14 = vector.load %arg2[%c0_7, %c0_8] : memref<16x1xf32, #tpu.memory_space<vmem>>, vector<16x1xf32>
    %cst_9 = arith.constant 9.99999974E-6 : f32
    %15 = vector.broadcast %cst_9 : f32 to vector<16x1xf32>
    %16 = arith.addf %13, %15 : vector<16x1xf32>
    %17 = math.rsqrt %16 : vector<16x1xf32>
    %18 = arith.mulf %14, %17 : vector<16x1xf32>
    %c0_10 = arith.constant 0 : index
    %c0_11 = arith.constant 0 : index
    %19 = vector.load %arg3[%c0_10, %c0_11] : memref<16x1xf32, #tpu.memory_space<vmem>>, vector<16x1xf32>
    %20 = arith.mulf %6, %18 : vector<16x1xf32>
    %21 = arith.subf %19, %20 : vector<16x1xf32>
    %22 = vector.broadcast %18 : vector<16x1xf32> to vector<16x512xf32>
    %23 = arith.mulf %2, %22 : vector<16x512xf32>
    %24 = vector.broadcast %21 : vector<16x1xf32> to vector<16x512xf32>
    %25 = arith.addf %23, %24 : vector<16x512xf32>
    %cst_12 = arith.constant 0.000000e+00 : f32
    %26 = vector.broadcast %cst_12 : f32 to vector<16x512xf32>
    %27 = arith.maximumf %25, %26 : vector<16x512xf32>
    %c0_13 = arith.constant 0 : index
    %c0_14 = arith.constant 0 : index
    %28 = vector.load %arg4[%c0_13, %c0_14] : memref<16x512xf32, #tpu.memory_space<vmem>>, vector<16x512xf32>
    tpu.vector_store %arg4[%c0_13, %c0_14], %27 {strides = array<i32>} : memref<16x512xf32, #tpu.memory_space<vmem>>, vector<16x512xf32>,
    return
  }
}

</mosaic_0001>

<bundles_post_ra>
// kernel: res_stem_cifar.1
= control target key start
LH: loop header
LB: loop body
LE: loop exit
PB: predicated region body
PF: predicated region fallthrough
CT: control target
= control target key end

     0   :  { %v300_v1 = vmov 0   ;;  %vm73_vm0 = vcmask 261120   ;;  %s437_s0 = inlined_call_operand.vmem [shape: bf16[32,512], index: 0, kind: input, shape index: {}]   ;;  %s438_s1 = inlined_call_operand.vmem [shape: bf16[16,32], index: 1, kind: input, shape index: {}]   ;;  %s439_s2 = inlined_call_operand.vmem [shape: f32[16,1], index: 2, kind: input, shape index: {}]   ;;  %s440_s3 = inlined_call_operand.vmem [shape: f32[16,1], index: 3, kind: input, shape index: {}]   ;;  %s441_s4 = inlined_call_operand.vmem [shape: f32[16,512], index: 4, kind: output, shape index: {}]  }
   0x1   :  { %v283_v0 = vld [vmem:[%s437_s0 + $0x4] ss:$16 sps:$4 sm:$0xff]   ;;  %109 = vmatprep.mubr.bf16.mxu0 %v300_v1  ;;  %152 = vmatprep.mubr.bf16.mxu1 %v300_v1  ;;  %v285_v2 = vld [vmem:[%s437_s0 + $0xc] ss:$16 sps:$4 sm:$0xff]   ;;  %v287_v3 = vld [vmem:[%s437_s0] ss:$16 sps:$4 sm:$0xff]  }
   0x2   :  { %281 = vset.pattern.permute.xlu0 %v300_v1  ;;  %282 = vset.pattern.permute.xlu1 %v300_v1  ;;  %v288_v4 = vld [vmem:[%s437_s0 + $0x8] ss:$16 sps:$4 sm:$0xff]   ;;  %v289_v5 = vld [vmem:[%s437_s0 + $0x24] ss:$16 sps:$4 sm:$0xff]   ;;  %v291_v6 = vld [vmem:[%s437_s0 + $0x2c] ss:$16 sps:$4 sm:$0xff]  }
   0x3   :  { %77 = vmatprep.subr.bf16.mxu0 %v283_v0  ;;  %120 = vmatprep.subr.bf16.mxu1 %v285_v2  ;;  %v293_v7 = vld [vmem:[%s437_s0 + $0x20] ss:$16 sps:$4 sm:$0xff]   ;;  %v294_v8 = vld [vmem:[%s437_s0 + $0x28] ss:$16 sps:$4 sm:$0xff]  }
   0x4   :  { %78 = vmatpush1.bf16.msra.mxu0 %v287_v3  ;;  %121 = vmatpush1.bf16.msra.mxu1 %v288_v4  ;;  %v295_v9 = vld [vmem:[%s438_s1] sm:$0xff]   ;;  %v200_v55 = vld [vmem:[%s439_s2 + $0x8] sm:$0xff] }
   0x5   :  { %79 = vmatprep.subr.bf16.mxu0 %v289_v5  ;;  %122 = vmatprep.subr.bf16.mxu1 %v291_v6  ;;  %v199_v52 = vld [vmem:[%s439_s2] sm:$0xff]  ;;  %v208_v62 = vld [vmem:[%s440_s3 + $0x8] sm:$0xff] }
   0x6   :  { %v207_v59 = vld [vmem:[%s440_s3] sm:$0xff] }
   0x8   :  { %80 = vmatpush1.bf16.msra.mxu0 %v293_v7  ;;  %123 = vmatpush1.bf16.msra.mxu1 %v294_v8 }
   0xb   :  { %278 = vmatmul.mubr.msk.bf16.vlgmr.msra.gmra.mrb[0].mxu0 %vm73_vm0, %v295_v9  ;;  %279 = vmatmul.mubr.msk.bf16.vlgmr.msra.gmra.mrb[0].mxu1 %vm73_vm0, %v295_v9 }
  0xde   :  { %v353_v10 = vpop.f32.mrb[0].mxu0  ;;  %v355_v11 = vpop.f32.mrb[0].mxu1 }
  0xdf   :  { %v175_v12 = vmul.f32 %v353_v10, %v353_v10  ;;  %v359_v13 = vpop.f32.mrb[1].mxu0  ;;  %v361_v14 = vpop.f32.mrb[1].mxu1  ;;  %v177_v19 = vmul.f32 %v355_v11, %v355_v11 }
  0xe0   :  { %v163_v15 = vadd.f32 %v359_v13, %v353_v10  ;;  %v176_v16 = vmul.f32 %v359_v13, %v359_v13  ;;  %v367_v17 = vpop.f32.mrb[2].mxu0  ;;  %v369_v18 = vpop.f32.mrb[2].mxu1  ;;  %v178_v31 = vmul.f32 %v361_v14, %v361_v14 }
  0xe1   :  { %v179_v20 = vmul.f32 %v367_v17, %v367_v17  ;;  %v375_v21 = vpop.f32.mrb[3].mxu0  ;;  %v377_v22 = vpop.f32.mrb[3].mxu1  ;;  %v181_v27 = vmul.f32 %v369_v18, %v369_v18 }
  0xe2   :  { %v168_v23 = vadd.f32 %v375_v21, %v367_v17  ;;  %v180_v24 = vmul.f32 %v375_v21, %v375_v21  ;;  %v164_v25 = vadd.f32 %v163_v15, %v355_v11  ;;  %v183_v26 = vadd.f32 %v176_v16, %v175_v12 }
  0xe3   :  { %v182_v33 = vmul.f32 %v377_v22, %v377_v22 }
  0xe4   :  { %v188_v28 = vadd.f32 %v180_v24, %v179_v20  ;;  %v165_v29 = vadd.f32 %v164_v25, %v361_v14  ;;  %v169_v30 = vadd.f32 %v168_v23, %v369_v18  ;;  %v184_v32 = vadd.f32 %v183_v26, %v177_v19 }
  0xe6   :  { %166 = vadd.xlane.f32.xlu0 %v165_v29  ;;  %v170_v34 = vadd.f32 %v169_v30, %v377_v22  ;;  %v189_v35 = vadd.f32 %v188_v28, %v181_v27  ;;  %v185_v36 = vadd.f32 %v184_v32, %v178_v31 }
  0xe8   :  { %v190_v37 = vadd.f32 %v189_v35, %v182_v33  ;;  %186 = vadd.xlane.f32.xlu1 %v185_v36 }
  0xea   :  { %171 = vadd.xlane.f32.xlu0 %v170_v34 }
  0xec   :  { %191 = vadd.xlane.f32.xlu1 %v190_v37 }
 0x173   :  { %v167_v38 = vpop.xlane.xlu0 %166 }
 0x174   :  { %v173_v39 = vmul.f32 0.001953125, %v167_v38 }
 0x175   :  { %v187_v41 = vpop.xlane.xlu1 %186 }
 0x176   :  { %v195_v40 = vmul.f32 %v173_v39, %v173_v39  ;;  %v193_v42 = vmul.f32 0.001953125, %v187_v41 }
 0x177   :  { %v172_v43 = vpop.xlane.xlu0 %171 }
 0x178   :  { %v174_v44 = vmul.f32 0.001953125, %v172_v43  ;;  %v197_v45 = vsub.f32 %v193_v42, %v195_v40 }
 0x179   :  { %v192_v47 = vpop.xlane.xlu1 %191 }
 0x17a   :  { %v196_v46 = vmul.f32 %v174_v44, %v174_v44  ;;  %v201_v48 = vadd.f32 1e-05, %v197_v45  ;;  %v194_v49 = vmul.f32 0.001953125, %v192_v47 }
 0x17c   :  { %296 = vrsqrt.f32 %v201_v48  ;;  %v198_v50 = vsub.f32 %v194_v49, %v196_v46 }
 0x17e   :  { %v202_v51 = vadd.f32 1e-05, %v198_v50 }
 0x180   :  { %298 = vrsqrt.f32 %v202_v51 }
 0x186   :  { %v297_v53 = vpop.eup %296 }
 0x187   :  { %v205_v54 = vmul.f32 %v297_v53, %v199_v52 }
 0x189   :  { %215 = vperm.xlu0 %281, %v205_v54   ;;  %v209_v58 = vmul.f32 %v205_v54, %v173_v39 }
 0x18a   :  { %v299_v56 = vpop.eup %298 }
 0x18b   :  { %v206_v57 = vmul.f32 %v299_v56, %v200_v55  ;;  %v211_v60 = vsub.f32 %v207_v59, %v209_v58 }
 0x18d   :  { %220 = vperm.xlu1 %282, %v206_v57   ;;  %v210_v61 = vmul.f32 %v206_v57, %v174_v44 }
 0x18f   :  { %v212_v63 = vsub.f32 %v208_v62, %v210_v61 }
 0x191   :  { %233 = vperm.xlu1 %282, %v211_v60  }
 0x195   :  { %238 = vperm.xlu1 %282, %v212_v63  }
 0x208   :  { %v216_v0 = vpop.permute.xlu0 %215 }
 0x209   :  { %v223_v2 = vmul.f32 %v216_v0, %v353_v10  ;;  %v224_v3 = vmul.f32 %v216_v0, %v359_v13  ;;  %v225_v4 = vmul.f32 %v216_v0, %v355_v11  ;;  %v226_v5 = vmul.f32 %v216_v0, %v361_v14 }
 0x20c   :  { %v221_v1 = vpop.permute.xlu1 %220 }
 0x20d   :  { %v227_v15 = vmul.f32 %v221_v1, %v367_v17  ;;  %v228_v16 = vmul.f32 %v221_v1, %v375_v21  ;;  %v229_v19 = vmul.f32 %v221_v1, %v369_v18  ;;  %v230_v20 = vmul.f32 %v221_v1, %v377_v22 }
 0x210   :  { %v234_v6 = vpop.permute.xlu1 %233 }
 0x211   :  { %v241_v7 = vadd.f32 %v234_v6, %v223_v2  ;;  %v242_v8 = vadd.f32 %v234_v6, %v224_v3  ;;  %v243_v9 = vadd.f32 %v234_v6, %v225_v4  ;;  %v244_v12 = vadd.f32 %v234_v6, %v226_v5 }
 0x213   :  { %v249_v10 = vmax.f32 %v241_v7, 0.0  ;;  %v250_v23 = vmax.f32 %v242_v8, 0.0  ;;  %v251_v13 = vmax.f32 %v243_v9, 0.0  ;;  %v252_v24 = vmax.f32 %v244_v12, 0.0 }
 0x214   :  { %v239_v11 = vpop.permute.xlu1 %238 }
 0x215   :  { %257 = vst [vmem:[%s441_s4] sm:$0xff] %v249_v10  ;;  %258 = vst [vmem:[%s441_s4 + $0x8] sm:$0xff] %v250_v23  ;;  %v245_v14 = vadd.f32 %v239_v11, %v227_v15  ;;  %v246_v17 = vadd.f32 %v239_v11, %v228_v16  ;;  %v247_v18 = vadd.f32 %v239_v11, %v229_v19 }
 0x216   :  { %259 = vst [vmem:[%s441_s4 + $0x10] sm:$0xff] %v251_v13  ;;  %260 = vst [vmem:[%s441_s4 + $0x18] sm:$0xff] %v252_v24  ;;  %v248_v21 = vadd.f32 %v239_v11, %v230_v20 }
 0x217   :  { %v253_v22 = vmax.f32 %v245_v14, 0.0  ;;  %v254_v25 = vmax.f32 %v246_v17, 0.0  ;;  %v255_v26 = vmax.f32 %v247_v18, 0.0 }
 0x218   :  { %v256_v27 = vmax.f32 %v248_v21, 0.0 }
 0x219   :  { %261 = vst [vmem:[%s441_s4 + $0x20] sm:$0xff] %v253_v22  ;;  %262 = vst [vmem:[%s441_s4 + $0x28] sm:$0xff] %v254_v25 }
 0x21a   :  { %263 = vst [vmem:[%s441_s4 + $0x30] sm:$0xff] %v255_v26  ;;  %264 = vst [vmem:[%s441_s4 + $0x38] sm:$0xff] %v256_v27 }

</bundles_post_ra>
